<compile_context>
chip_gen: v6e
topology: v6e:2x2x1
jax: 0.10.0
libtpu: 0.0.40
codegen_flags: <defaults>
</compile_context>

<pallas_src>
import functools

import jax
import jax.numpy as jnp
from jax.experimental import pallas as pl
from jax.experimental.pallas import tpu as pltpu


# Table sizes up to this many bytes stay resident in VMEM (headroom even on
# v7x, which has only 64 MiB physical VMEM per TensorCore).
_RESIDENT_TABLE_CAP_BYTES = 24 * 1024 * 1024
# One-hot gather only pays off while the (R, G) one-hot stays small.
_RESIDENT_MAX_GROUPS = 4096

_VMEM_ROWS_PER_STEP = 256   # R for the VMEM-resident path (multiple of 8)
_DMA_ROWS_PER_STEP = 16     # rows batched per step on the HBM-gather path


def _round_up(x, m):
    return ((x + m - 1) // m) * m


def _block_spec(block_shape, index_map, buffers=None):
    """BlockSpec with optional deeper pipelining (graceful on older jax)."""
    if buffers is not None:
        try:
            return pl.BlockSpec(block_shape, index_map,
                                pipeline_mode=pl.Buffered(buffers))
        except (AttributeError, TypeError):
            pass
    return pl.BlockSpec(block_shape, index_map)


# ---------------------------------------------------------------------------
# Kernels
# ---------------------------------------------------------------------------

def _vmem_gather_kernel(idx_ref, table_ref, out_ref):
    """Gather R rows from the VMEM-resident table via a one-hot MXU matmul."""
    ids = idx_ref[...]                                      # (R, 1) int32
    r = ids.shape[0]
    g = table_ref.shape[0]
    onehot = (ids == jax.lax.broadcasted_iota(jnp.int32, (r, g), 1)
              ).astype(table_ref.dtype)                     # (R, G), one 1 per row
    out_ref[...] = jnp.dot(onehot, table_ref[...],
                           preferred_element_type=jnp.float32
                           ).astype(out_ref.dtype)


def _dma_gather_kernel(idx_ref, *refs):
    """Copy the RB gathered (1, 1, D) rows into one (1, RB, D) output block."""
    del idx_ref                     # only consumed by the BlockSpec index_maps
    out_ref = refs[-1]
    row_refs = refs[:-1]
    for j, row_ref in enumerate(row_refs):
        out_ref[0, j, :] = row_ref[0, 0, :]    # one sublane each, lane offset 0


# ---------------------------------------------------------------------------
# Path implementations
# ---------------------------------------------------------------------------

def _gather_vmem_resident(idx, table, n):
    g, d = table.shape
    itemsize = jnp.dtype(table.dtype).itemsize

    r_blk = min(_VMEM_ROWS_PER_STEP, _round_up(n, 8))
    n_pad = _round_up(n, r_blk)
    if n_pad != n:
        idx = jnp.concatenate([idx, jnp.zeros((n_pad - n,), jnp.int32)])
    num_blocks = n_pad // r_blk
    idx2d = idx.reshape(n_pad, 1)   # sublane-major: broadcasts against (R, G)

    table_bytes = g * d * itemsize
    out_blk_bytes = r_blk * d * itemsize
    onehot_bytes = r_blk * g * 4
    needed = (table_bytes + 3 * (out_blk_bytes + r_blk * 4)
              + 2 * onehot_bytes + (2 << 20))
    vmem_limit = int(min(max(needed, 32 << 20), 56 << 20))

    cost = pl.CostEstimate(
        flops=2 * n_pad * g * d,
        transcendentals=0,
        bytes_accessed=table_bytes + n_pad * 4 + n_pad * d * itemsize)

    out = pl.pallas_call(
        _vmem_gather_kernel,
        out_shape=jax.ShapeDtypeStruct((n_pad, d), table.dtype),
        grid=(num_blocks,),
        in_specs=[
            pl.BlockSpec((r_blk, 1), lambda i: (i, 0)),    # index block
            pl.BlockSpec((g, d), lambda i: (0, 0)),        # resident table
        ],
        out_specs=pl.BlockSpec((r_blk, d), lambda i: (i, 0)),
        compiler_params=pltpu.CompilerParams(
            dimension_semantics=("parallel",),
            vmem_limit_bytes=vmem_limit),
        cost_estimate=cost,
    )(idx2d, table)
    return out[:n]


def _gather_hbm_dma(idx, table, n):
    g, d = table.shape
    itemsize = jnp.dtype(table.dtype).itemsize
    rb = _DMA_ROWS_PER_STEP
    n_pad = _round_up(n, rb)
    if n_pad != n:
        # Padded tail ids repeat the last real id (rows are sliced off below).
        idx = jnp.concatenate(
            [idx, jnp.full((n_pad - n,), idx[n - 1], jnp.int32)])
    num_blocks = n_pad // rb
    table3d = table.reshape(g, 1, d)   # trailing dims (1, d) span the full array

    def row_spec(j):
        # index_map receives (grid_i, *scalar_prefetch_refs); returning
        # idx_ref[...] makes Pallas DMA exactly that table row from HBM.
        return _block_spec(
            (1, 1, d),
            lambda i, idx_ref, j=j: (idx_ref[i * rb + j], 0, 0),
            buffers=3)

    grid_spec = pltpu.PrefetchScalarGridSpec(
        num_scalar_prefetch=1,
        grid=(num_blocks,),
        in_specs=[row_spec(j) for j in range(rb)],
        out_specs=pl.BlockSpec((1, rb, d), lambda i, idx_ref: (i, 0, 0)),
    )

    cost = pl.CostEstimate(
        flops=0, transcendentals=0,
        bytes_accessed=2 * n_pad * d * itemsize + n_pad * 4)

    packed = pl.pallas_call(
        _dma_gather_kernel,
        out_shape=jax.ShapeDtypeStruct((num_blocks, rb, d), table.dtype),
        grid_spec=grid_spec,
        compiler_params=pltpu.CompilerParams(
            dimension_semantics=("parallel",)),
        cost_estimate=cost,
    )(idx, *([table3d] * rb))

    return packed.reshape(n_pad, d)[:n]


# ---------------------------------------------------------------------------
# Public forward
# ---------------------------------------------------------------------------

def group_embedding_forward(num_group, embedding_table, *, force_path=None):
    """Equivalent of GroupEmbeddingLayer.forward(num_group).

    num_group:       integer array of arbitrary shape (group ids).
    embedding_table: (number_group, embedding_dim) table.
    force_path:      None (auto), "vmem", or "dma" (testing hook).
    returns:         num_group.shape + (embedding_dim,)
    """
    idx_shape = tuple(num_group.shape)
    g, d = embedding_table.shape
    itemsize = jnp.dtype(embedding_table.dtype).itemsize
    table_bytes = g * d * itemsize

    n = 1
    for s in idx_shape:
        n *= int(s)
    if n == 0:  # empty index tensor -> empty result, no kernel launch
        return jnp.zeros(idx_shape + (d,), dtype=embedding_table.dtype)

    # Flattened int32 ids; clamp out-of-range ids (jnp.take semantics).
    idx = jnp.clip(num_group.reshape(n).astype(jnp.int32), 0, g - 1)

    if force_path is None:
        use_vmem = (table_bytes <= _RESIDENT_TABLE_CAP_BYTES
                    and g <= _RESIDENT_MAX_GROUPS)
    else:
        use_vmem = (force_path == "vmem")

    if use_vmem:
        out2d = _gather_vmem_resident(idx, embedding_table, n)
    else:
        out2d = _gather_hbm_dma(idx, embedding_table, n)
    return out2d.reshape(idx_shape + (d,))


if __name__ == "__main__":
    # Deterministic synthetic parameters (nn.Embedding default init ~ N(0, 1)).
    number_group = 16
    embedding_dim = 32
    batch, seq = 2, 8

    key = jax.random.PRNGKey(0)
    k_table, k_idx = jax.random.split(key)
    embedding_table = jax.random.normal(
        k_table, (number_group, embedding_dim), dtype=jnp.float32)
    num_group = jax.random.randint(
        k_idx, (batch, seq), minval=0, maxval=number_group, dtype=jnp.int32)

    # Reference: plain JAX gather (same semantics as nn.Embedding for valid ids).
    ref = jnp.take(embedding_table, num_group, axis=0)

    # Primary path: VMEM-resident table + one-hot MXU gather.
    fwd = jax.jit(group_embedding_forward)
    group_embeds = jax.block_until_ready(fwd(num_group, embedding_table))
    assert group_embeds.shape == (batch, seq, embedding_dim)
    assert jnp.allclose(group_embeds, ref, atol=1e-6, rtol=1e-6)

    # Also exercise the large-table fallback (scalar-prefetched DMA row gather).
    fwd_dma = jax.jit(
        functools.partial(group_embedding_forward, force_path="dma"))
    group_embeds_dma = jax.block_until_ready(fwd_dma(num_group, embedding_table))
    assert jnp.allclose(group_embeds_dma, ref, atol=1e-6, rtol=1e-6)

    print("KERNEL_OK")
</pallas_src>

<mosaic_0001>
module attributes {stable_mosaic.version = 11 : i64} {
  func.func @_vmem_gather_kernel(%arg0: i32, %arg1: memref<16x1xi32, #tpu.memory_space<vmem>>, %arg2: memref<16x32xf32, #tpu.memory_space<vmem>>, %arg3: memref<16x32xf32, #tpu.memory_space<vmem>>) attributes {dimension_semantics = [#tpu.dimension_semantics<parallel>], iteration_bounds = array<i64: 1>, scalar_prefetch = 0 : i64, scratch_operands = 0 : i64, tpu.core_type = #tpu.core_type<tc>, window_params = [{transform_indices = @transform_0, window_bounds = array<i64: 16, 1>}, {pipeline_mode = #tpu.pipeline_mode<synchronous>, transform_indices = @transform_1, window_bounds = array<i64: 16, 32>}, {transform_indices = @transform_2, window_bounds = array<i64: 16, 32>}]} {
    %c0 = arith.constant 0 : index
    %c0_0 = arith.constant 0 : index
    %0 = vector.load %arg1[%c0, %c0_0] : memref<16x1xi32, #tpu.memory_space<vmem>>, vector<16x1xi32>
    %1 = tpu.iota {dimensions = array<i32: 1>} : vector<16x16xi32>
    %2 = vector.broadcast %0 : vector<16x1xi32> to vector<16x16xi32>
    %3 = arith.cmpi eq, %2, %1 : vector<16x16xi32>
    %4 = arith.extui %3 : vector<16x16xi1> to vector<16x16xi32>
    %5 = arith.sitofp %4 : vector<16x16xi32> to vector<16x16xf32>
    %c0_1 = arith.constant 0 : index
    %c0_2 = arith.constant 0 : index
    %6 = vector.load %arg2[%c0_1, %c0_2] : memref<16x32xf32, #tpu.memory_space<vmem>>, vector<16x32xf32>
    %cst = arith.constant dense<0.000000e+00> : vector<16x32xf32>
    %7 = tpu.matmul %5, %6, %cst {dimension_numbers = #tpu.dot_dimension_numbers<[1], [0], [0], [1], [0, 0, 1, 1], [], []>} : vector<16x16xf32>, vector<16x32xf32>, vector<16x32xf32> -> vector<16x32xf32>
    %c0_3 = arith.constant 0 : index
    %c0_4 = arith.constant 0 : index
    %8 = vector.load %arg3[%c0_3, %c0_4] : memref<16x32xf32, #tpu.memory_space<vmem>>, vector<16x32xf32>
    tpu.vector_store %arg3[%c0_3, %c0_4], %7 {strides = array<i32>} : memref<16x32xf32, #tpu.memory_space<vmem>>, vector<16x32xf32>,
    return
  }
  func.func @transform_0(%arg0: i32) -> (i32, i32) {
    %c0_i32 = arith.constant 0 : i32
    %c0_i32_0 = arith.constant 0 : i32
    return %arg0, %c0_i32 : i32, i32
  }
  func.func @transform_1(%arg0: i32) -> (i32, i32) {
    %c0_i32 = arith.constant 0 : i32
    %c0_i32_0 = arith.constant 0 : i32
    %c0_i32_1 = arith.constant 0 : i32
    return %c0_i32, %c0_i32_0 : i32, i32
  }
  func.func @transform_2(%arg0: i32) -> (i32, i32) {
    %c0_i32 = arith.constant 0 : i32
    %c0_i32_0 = arith.constant 0 : i32
    return %arg0, %c0_i32 : i32, i32
  }
}

</mosaic_0001>

<bundles_post_ra>
// kernel: group_embedding_forward.1
= control target key start
LH: loop header
LB: loop body
LE: loop exit
PB: predicated region body
PF: predicated region fallthrough
CT: control target
= control target key end

     0   :  { %v174_v2 = vmov 0   ;;  %s209_s0 = inlined_call_operand.vmem [shape: s32[16,1], index: 0, kind: input, shape index: {}]   ;;  %s210_s1 = inlined_call_operand.vmem [shape: f32[16,32], index: 1, kind: input, shape index: {}]   ;;  %s211_s2 = inlined_call_operand.hbm [shape: f32[16,32], index: 2, kind: output, shape index: {}]  }
   0x1   :  { %v12_v0 = vld [vmem:[%s209_s0] sm:$0xff]  ;;  %v29_v1 = vld [vmem:[%s210_s1 + $0x8] sm:$0xff]  ;;  %151 = vset.pattern.permute.xlu0 %v174_v2 }
   0x2   :  { %139 = vmatprep.subr.mxu0 %v29_v1  ;;  %v28_v3 = vld [vmem:[%s210_s1] sm:$0xff] }
   0x3   :  { %7 = vsyncpa [#allocation3], 0  ;;  %17 = vperm.xlu0 %151, %v12_v0   ;;  %140 = vmatpush3.msra.mxu0 %v29_v1  ;;  %v13_v4 = vld [vmem:[%s209_s0 + $0x8] sm:$0xff]  ;;  %v14_v5 = vlaneseq  ;;  %vm30_vm0 = vcmask 130048   ;;  %v175_v8 = vmov 0.0   ;;  %s176_s1 = smov [#allocation2]  }
   0x4   :  { %141 = vmatprep.subr.mxu0 %v28_v3  ;;  %s120_s17 = sshll.u32 %s176_s1, 4  ;;  %vm112_vm3 = vcmask 261120   ;;  %s121_s17 = int_to_ptr.vmem [resolvable:$true] %s120_s17 }
   0x5   :  { %142 = vmatpush3.msra.mxu0 %v28_v3  ;;  %v15_v6 = vand.u32 127, %v14_v5  ;;  %s152_s0 = scalar_lea.vmem %s121_s17, 256  ;;  %p157_p1 = scmp.lt.s32.totalorder %s121_s17, %s121_s17 }
   0x6   :  { %p153_p0 = scmp.ne.s32.totalorder %s121_s17, %s152_s0  ;;  %p158_p2 = scmp.lt.s32.totalorder %s152_s0, %s152_s0 }
   0x7   :  { %20 = vperm.xlu0 %151, %v13_v4  }
   0x8   :  { %p159_p3 = por %p158_p2, %p157_p1 }
   0xa   :  { %p160_p4 = pnand %p159_p3, %p153_p0 }
  0x7e   :  { %v18_v7 = vpop.permute.xlu0 %17 }
  0x7f   :  { %vm22_vm1 = vcmp.eq.s32.totalorder %v18_v7, %v15_v6 }
  0x80   :  { %v131_v9 = vsel %vm22_vm1, 1.0, %v175_v8 }
  0x81   :  { %143 = vmatprep.mubr.msk.f32.mxu0 %vm30_vm0, %v131_v9 }
  0x82   :  { %v21_v10 = vpop.permute.xlu0 %20 }
  0x83   :  { %vm23_vm2 = vcmp.eq.s32.totalorder %v21_v10, %v15_v6 }
  0x84   :  { %v132_v11 = vsel %vm23_vm2, 1.0, %v175_v8 }
  0x85   :  { %144 = vmatmul.mubr.msk.f32.vlgmr.msra.gmra.mxu0 %vm30_vm0, %v132_v11 }
 0x145   :  { %v145_v12 = vpop.f32.mrf.mxu0 }
 0x146   :  { %114 = vst.msk [vmem:[#allocation2 + $0x8] sm:$0xff] %vm112_vm3, %v145_v12 }
 0x147   :  { %v103_v13 = vpop.f32.mrf.mxu0 }
 0x148   :  { %113 = vst.msk [vmem:[#allocation2] sm:$0xff] %vm112_vm3, %v103_v13 }
 0x149   :  { %163 = shalt.err (!%p160_p4)
}
 0x14a   :  { %s177_s18 = smov 128   ;;  %s178_s19 = smov 8  }
 0x14b   :  { %126 = dma.vmem_to_hbm [thread:$0]  %s121_s17, 256, %s211_s2, [#allocation3], %s177_s18, %s177_s18, %s178_s19  }
 0x14c   :  { %172 = dma.done.wait [#allocation3], 256  }
 0x14d   :  { %173 = vsyncadd [#allocation3], 4294967040 }
 0x14e   :  { %130 = vsyncpa [#allocation3], 1 }

</bundles_post_ra>
